<compile_context>
chip_gen: v5e
topology: v5e:2x2
jax: 0.10.0
libtpu: 0.0.40
codegen_flags: <defaults>
</compile_context>

<pallas_src>
import functools

import numpy as np
import jax
import jax.numpy as jnp
from jax.experimental import pallas as pl
from jax.experimental.pallas import tpu as pltpu


def _expand_kernel(x_ref, e_ref, f_ref, o_ref, *, gain):
    """Builds one (H*gain, W*gain) output plane.

    x_ref : (gain*gain, H, W)   input channel planes feeding this output plane
    e_ref : (gain, W, W*gain)   width scatter matrices,  E[s2][j, j*g + s2] = 1
    f_ref : (gain, H*gain, H)   height scatter matrices, F[s1][i*g + s1, i] = 1
    o_ref : (H*gain, W*gain)
    """
    g = gain
    acc = None
    for s1 in range(g):
        t = None
        for s2 in range(g):
            plane = x_ref[s1 * g + s2]                       # (H, W)
            c = jnp.dot(plane, e_ref[s2],
                        preferred_element_type=jnp.float32,
                        precision=jax.lax.Precision.HIGHEST)  # (H, W*g)
            t = c if t is None else t + c
        r = jnp.dot(f_ref[s1], t,
                    preferred_element_type=jnp.float32,
                    precision=jax.lax.Precision.HIGHEST)      # (H*g, W*g)
        acc = r if acc is None else acc + r
    o_ref[...] = acc.astype(o_ref.dtype)


def expand(x, gain=2):
    """Pallas implementation of yolov5 Expand.forward (NCHW in, NCHW out)."""
    b, c, h, w = x.shape
    g = gain
    assert c % (g * g) == 0, (c, g)
    c_out = c // (g * g)
    dt = x.dtype

    # Free, contiguous split of the channel dim: (b, c, h, w) -> (b, g*g, c_out, h, w)
    x5 = x.reshape(b, g * g, c_out, h, w)

    # Constant 0/1 scatter matrices (resident in VMEM across the whole grid).
    kw = jnp.arange(w * g)
    jw = jnp.arange(w)
    E = jnp.stack([(kw[None, :] == jw[:, None] * g + s2).astype(dt)
                   for s2 in range(g)])                       # (g, W, W*g)
    kh = jnp.arange(h * g)
    ih = jnp.arange(h)
    F = jnp.stack([(kh[:, None] == ih[None, :] * g + s1).astype(dt)
                   for s1 in range(g)])                       # (g, H*g, H)

    itemsize = jnp.dtype(dt).itemsize
    flops = 2 * b * c_out * g * (g * h * w * (w * g) + h * (h * g) * (w * g))
    bytes_accessed = (x.size + E.size + F.size + b * c_out * (h * g) * (w * g)) * itemsize

    out = pl.pallas_call(
        functools.partial(_expand_kernel, gain=g),
        out_shape=jax.ShapeDtypeStruct((b, c_out, h * g, w * g), dt),
        grid=(b, c_out),
        in_specs=[
            # the g*g planes needed for this (batch, c_out) output plane
            pl.BlockSpec((None, g * g, None, h, w),
                         lambda bi, ci: (bi, 0, ci, 0, 0)),
            # tiny scatter matrices: full-array blocks, constant index map
            pl.BlockSpec((g, w, w * g), lambda bi, ci: (0, 0, 0)),
            pl.BlockSpec((g, h * g, h), lambda bi, ci: (0, 0, 0)),
        ],
        out_specs=pl.BlockSpec((None, None, h * g, w * g),
                               lambda bi, ci: (bi, ci, 0, 0)),
        compiler_params=pltpu.CompilerParams(
            dimension_semantics=("parallel", "parallel")),
        cost_estimate=pl.CostEstimate(flops=flops, transcendentals=0,
                                      bytes_accessed=bytes_accessed),
    )(x5, E, F)
    return out


def expand_reference(x, gain=2):
    """Pure-jnp mirror of the PyTorch module (view/permute/view)."""
    b, c, h, w = x.shape
    s = gain
    c_out = c // (s * s)
    y = x.reshape(b, s, s, c_out, h, w)
    y = jnp.transpose(y, (0, 3, 4, 1, 5, 2))
    return y.reshape(b, c_out, h * s, w * s)


if __name__ == "__main__":
    key = jax.random.PRNGKey(0)
    b, c, h, w, gain = 2, 4, 16, 16, 2
    x = jax.random.normal(key, (b, c, h, w), jnp.float32)   # NCHW, like PyTorch

    fwd = jax.jit(functools.partial(expand, gain=gain))
    out = jax.block_until_ready(fwd(x))

    ref = jax.block_until_ready(expand_reference(x, gain=gain))
    assert out.shape == (b, c // gain ** 2, h * gain, w * gain), out.shape
    np.testing.assert_allclose(np.asarray(out), np.asarray(ref),
                               atol=1e-2, rtol=1e-2)

    print("KERNEL_OK")
</pallas_src>

<mosaic_0001>
module attributes {stable_mosaic.version = 11 : i64} {
  func.func @_expand_kernel(%arg0: i32, %arg1: i32, %arg2: memref<1x4x1x16x16xf32, #tpu.memory_space<vmem>>, %arg3: memref<2x16x32xf32, #tpu.memory_space<vmem>>, %arg4: memref<2x32x16xf32, #tpu.memory_space<vmem>>, %arg5: memref<1x1x32x32xf32, #tpu.memory_space<vmem>>) attributes {dimension_semantics = [#tpu.dimension_semantics<parallel>, #tpu.dimension_semantics<parallel>], iteration_bounds = array<i64: 2, 1>, scalar_prefetch = 0 : i64, scratch_operands = 0 : i64, tpu.core_type = #tpu.core_type<tc>, window_params = [{transform_indices = @transform_0, window_bounds = array<i64: 1, 4, 1, 16, 16>}, {pipeline_mode = #tpu.pipeline_mode<synchronous>, transform_indices = @transform_1, window_bounds = array<i64: 2, 16, 32>}, {pipeline_mode = #tpu.pipeline_mode<synchronous>, transform_indices = @transform_2, window_bounds = array<i64: 2, 32, 16>}, {transform_indices = @transform_3, window_bounds = array<i64: 1, 1, 32, 32>}]} {
    %c0 = arith.constant 0 : index
    %c0_0 = arith.constant 0 : index
    %c0_1 = arith.constant 0 : index
    %c0_2 = arith.constant 0 : index
    %c0_3 = arith.constant 0 : index
    %0 = vector.load %arg2[%c0, %c0_0, %c0_1, %c0_2, %c0_3] : memref<1x4x1x16x16xf32, #tpu.memory_space<vmem>>, vector<1x1x1x16x16xf32>
    %1 = vector.shape_cast %0 : vector<1x1x1x16x16xf32> to vector<16x16xf32>
    %c0_4 = arith.constant 0 : index
    %c0_5 = arith.constant 0 : index
    %c0_6 = arith.constant 0 : index
    %2 = vector.load %arg3[%c0_4, %c0_5, %c0_6] : memref<2x16x32xf32, #tpu.memory_space<vmem>>, vector<1x16x32xf32>
    %3 = vector.shape_cast %2 : vector<1x16x32xf32> to vector<16x32xf32>
    %cst = arith.constant dense<0.000000e+00> : vector<16x32xf32>
    %4 = tpu.matmul %1, %3, %cst {dimension_numbers = #tpu.dot_dimension_numbers<[1], [0], [0], [1], [0, 0, 1, 1], [], []>, precision = #tpu.contract_precision<fp32>} : vector<16x16xf32>, vector<16x32xf32>, vector<16x32xf32> -> vector<16x32xf32>
    %c0_7 = arith.constant 0 : index
    %c1 = arith.constant 1 : index
    %c0_8 = arith.constant 0 : index
    %c0_9 = arith.constant 0 : index
    %c0_10 = arith.constant 0 : index
    %5 = vector.load %arg2[%c0_7, %c1, %c0_8, %c0_9, %c0_10] : memref<1x4x1x16x16xf32, #tpu.memory_space<vmem>>, vector<1x1x1x16x16xf32>
    %6 = vector.shape_cast %5 : vector<1x1x1x16x16xf32> to vector<16x16xf32>
    %c1_11 = arith.constant 1 : index
    %c0_12 = arith.constant 0 : index
    %c0_13 = arith.constant 0 : index
    %7 = vector.load %arg3[%c1_11, %c0_12, %c0_13] : memref<2x16x32xf32, #tpu.memory_space<vmem>>, vector<1x16x32xf32>
    %8 = vector.shape_cast %7 : vector<1x16x32xf32> to vector<16x32xf32>
    %cst_14 = arith.constant dense<0.000000e+00> : vector<16x32xf32>
    %9 = tpu.matmul %6, %8, %cst_14 {dimension_numbers = #tpu.dot_dimension_numbers<[1], [0], [0], [1], [0, 0, 1, 1], [], []>, precision = #tpu.contract_precision<fp32>} : vector<16x16xf32>, vector<16x32xf32>, vector<16x32xf32> -> vector<16x32xf32>
    %10 = arith.addf %4, %9 : vector<16x32xf32>
    %c0_15 = arith.constant 0 : index
    %c0_16 = arith.constant 0 : index
    %c0_17 = arith.constant 0 : index
    %11 = vector.load %arg4[%c0_15, %c0_16, %c0_17] : memref<2x32x16xf32, #tpu.memory_space<vmem>>, vector<1x32x16xf32>
    %12 = vector.shape_cast %11 : vector<1x32x16xf32> to vector<32x16xf32>
    %cst_18 = arith.constant dense<0.000000e+00> : vector<32x32xf32>
    %13 = tpu.matmul %12, %10, %cst_18 {dimension_numbers = #tpu.dot_dimension_numbers<[1], [0], [0], [1], [0, 0, 1, 1], [], []>, precision = #tpu.contract_precision<fp32>} : vector<32x16xf32>, vector<16x32xf32>, vector<32x32xf32> -> vector<32x32xf32>
    %c0_19 = arith.constant 0 : index
    %c2 = arith.constant 2 : index
    %c0_20 = arith.constant 0 : index
    %c0_21 = arith.constant 0 : index
    %c0_22 = arith.constant 0 : index
    %14 = vector.load %arg2[%c0_19, %c2, %c0_20, %c0_21, %c0_22] : memref<1x4x1x16x16xf32, #tpu.memory_space<vmem>>, vector<1x1x1x16x16xf32>
    %15 = vector.shape_cast %14 : vector<1x1x1x16x16xf32> to vector<16x16xf32>
    %c0_23 = arith.constant 0 : index
    %c0_24 = arith.constant 0 : index
    %c0_25 = arith.constant 0 : index
    %16 = vector.load %arg3[%c0_23, %c0_24, %c0_25] : memref<2x16x32xf32, #tpu.memory_space<vmem>>, vector<1x16x32xf32>
    %17 = vector.shape_cast %16 : vector<1x16x32xf32> to vector<16x32xf32>
    %cst_26 = arith.constant dense<0.000000e+00> : vector<16x32xf32>
    %18 = tpu.matmul %15, %17, %cst_26 {dimension_numbers = #tpu.dot_dimension_numbers<[1], [0], [0], [1], [0, 0, 1, 1], [], []>, precision = #tpu.contract_precision<fp32>} : vector<16x16xf32>, vector<16x32xf32>, vector<16x32xf32> -> vector<16x32xf32>
    %c0_27 = arith.constant 0 : index
    %c3 = arith.constant 3 : index
    %c0_28 = arith.constant 0 : index
    %c0_29 = arith.constant 0 : index
    %c0_30 = arith.constant 0 : index
    %19 = vector.load %arg2[%c0_27, %c3, %c0_28, %c0_29, %c0_30] : memref<1x4x1x16x16xf32, #tpu.memory_space<vmem>>, vector<1x1x1x16x16xf32>
    %20 = vector.shape_cast %19 : vector<1x1x1x16x16xf32> to vector<16x16xf32>
    %c1_31 = arith.constant 1 : index
    %c0_32 = arith.constant 0 : index
    %c0_33 = arith.constant 0 : index
    %21 = vector.load %arg3[%c1_31, %c0_32, %c0_33] : memref<2x16x32xf32, #tpu.memory_space<vmem>>, vector<1x16x32xf32>
    %22 = vector.shape_cast %21 : vector<1x16x32xf32> to vector<16x32xf32>
    %cst_34 = arith.constant dense<0.000000e+00> : vector<16x32xf32>
    %23 = tpu.matmul %20, %22, %cst_34 {dimension_numbers = #tpu.dot_dimension_numbers<[1], [0], [0], [1], [0, 0, 1, 1], [], []>, precision = #tpu.contract_precision<fp32>} : vector<16x16xf32>, vector<16x32xf32>, vector<16x32xf32> -> vector<16x32xf32>
    %24 = arith.addf %18, %23 : vector<16x32xf32>
    %c1_35 = arith.constant 1 : index
    %c0_36 = arith.constant 0 : index
    %c0_37 = arith.constant 0 : index
    %25 = vector.load %arg4[%c1_35, %c0_36, %c0_37] : memref<2x32x16xf32, #tpu.memory_space<vmem>>, vector<1x32x16xf32>
    %26 = vector.shape_cast %25 : vector<1x32x16xf32> to vector<32x16xf32>
    %cst_38 = arith.constant dense<0.000000e+00> : vector<32x32xf32>
    %27 = tpu.matmul %26, %24, %cst_38 {dimension_numbers = #tpu.dot_dimension_numbers<[1], [0], [0], [1], [0, 0, 1, 1], [], []>, precision = #tpu.contract_precision<fp32>} : vector<32x16xf32>, vector<16x32xf32>, vector<32x32xf32> -> vector<32x32xf32>
    %28 = arith.addf %13, %27 : vector<32x32xf32>
    %c0_39 = arith.constant 0 : index
    %c0_40 = arith.constant 0 : index
    %c0_41 = arith.constant 0 : index
    %c0_42 = arith.constant 0 : index
    %29 = vector.load %arg5[%c0_39, %c0_40, %c0_41, %c0_42] : memref<1x1x32x32xf32, #tpu.memory_space<vmem>>, vector<1x1x32x32xf32>
    %30 = vector.shape_cast %29 : vector<1x1x32x32xf32> to vector<32x32xf32>
    %31 = vector.shape_cast %28 : vector<32x32xf32> to vector<1x1x32x32xf32>
    tpu.vector_store %arg5[%c0_39, %c0_40, %c0_41, %c0_42], %31 {strides = array<i32>} : memref<1x1x32x32xf32, #tpu.memory_space<vmem>>, vector<1x1x32x32xf32>,
    return
  }
  func.func @transform_0(%arg0: i32, %arg1: i32) -> (i32, i32, i32, i32, i32) {
    %c0_i32 = arith.constant 0 : i32
    %c0_i32_0 = arith.constant 0 : i32
    %c0_i32_1 = arith.constant 0 : i32
    %c0_i32_2 = arith.constant 0 : i32
    return %arg0, %c0_i32, %arg1, %c0_i32_0, %c0_i32_1 : i32, i32, i32, i32, i32
  }
  func.func @transform_1(%arg0: i32, %arg1: i32) -> (i32, i32, i32) {
    %c0_i32 = arith.constant 0 : i32
    %c0_i32_0 = arith.constant 0 : i32
    %c0_i32_1 = arith.constant 0 : i32
    %c0_i32_2 = arith.constant 0 : i32
    return %c0_i32, %c0_i32_0, %c0_i32_1 : i32, i32, i32
  }
  func.func @transform_2(%arg0: i32, %arg1: i32) -> (i32, i32, i32) {
    %c0_i32 = arith.constant 0 : i32
    %c0_i32_0 = arith.constant 0 : i32
    %c0_i32_1 = arith.constant 0 : i32
    %c0_i32_2 = arith.constant 0 : i32
    return %c0_i32, %c0_i32_0, %c0_i32_1 : i32, i32, i32
  }
  func.func @transform_3(%arg0: i32, %arg1: i32) -> (i32, i32, i32, i32) {
    %c0_i32 = arith.constant 0 : i32
    %c0_i32_0 = arith.constant 0 : i32
    %c0_i32_1 = arith.constant 0 : i32
    return %arg0, %arg1, %c0_i32, %c0_i32_0 : i32, i32, i32, i32
  }
}

</mosaic_0001>

<bundles_post_ra>
// kernel: expand.1
= control target key start
LH: loop header
LB: loop body
LE: loop exit
PB: predicated region body
PF: predicated region fallthrough
CT: control target
= control target key end

     0   :  { %8 = vsyncpa [#allocation3], 0  ;;  %s2142_s0 = inlined_call_operand.vmem [shape: f32[2,4,1,16,16], index: 0, kind: input, shape index: {}]   ;;  %s2143_s1 = inlined_call_operand.vmem [shape: f32[2,16,32], index: 1, kind: input, shape index: {}]   ;;  %s2144_s2 = inlined_call_operand.vmem [shape: f32[2,32,16], index: 2, kind: input, shape index: {}]   ;;  %s2145_s3 = inlined_call_operand.hbm [shape: f32[2,1,32,32], index: 3, kind: output, shape index: {}]  }
   0x1   :  { %10 = vsyncpa [#allocation3 + $0x1], 0  ;;  %s1826_s12 = smov 0   ;;  %s1828_s13 = smov 0  }
   0x2   :  { %s1830_s14 = smov 0   ;;  %s1832_s15 = smov 0  }
   0x3   :  { %s1834_s16 = smov 0   ;;  %s1836_s17 = smov 0  }
   0x4 LB: > { %s1640_s18 = sadd.s32 4294967295, %s1802_s17   ;;  %s1641_s19 = sadd.s32 4294967294, %s1802_s17   ;;  %s1802_s17 = sphi %s1836_s17, %s16_s17   ;;  %s1798_s16 = sphi %s1834_s16, %s2152_s16   ;;  %s1794_s15 = sphi %s1832_s15, %s2151_s15   ;;  %s1790_s14 = sphi %s1830_s14, %s2150_s14   ;;  %s1786_s13 = sphi %s1828_s13, %s2149_s13   ;;  %s1782_s12 = sphi %s1826_s12, %s2148_s12  }
   0x5   : > { %s28_s20 = sadd.s32 1, %s1798_s16  ;;  %s107_s21 = sadd.s32 1, %s1790_s14 }
   0x6   : > { %p30_p0 = scmp.ge.s32.totalorder %s28_s20, 2  ;;  %p117_p1 = scmp.ne.s32.totalorder %s1790_s14, %s1786_s13 }
   0x7   : > { %p118_p2 = scmp.eq.s32.totalorder %s1640_s18, 1  ;;  %p123_p3 = scmp.ne.s32.totalorder %s1786_s13, %s1782_s12 }
   0x8   : > { %s2154_s20 = smov (%p30_p0, %s28_s20), 0  ;;  %p124_p5 = scmp.eq.s32.totalorder %s1641_s19, 1 }
   0x9   : > { %p1866_p4 = por %p118_p2, %p117_p1  ;;  %s102_s23 = ssub.s32 %s1798_s16, %s2154_s20 }
   0xa   : > { %p1644_p6 = scmp.ge.s32.totalorder %s1802_s17, 1  ;;  %p105_p7 = scmp.eq.s32.totalorder %s102_s23, 0 }
   0xb   : > { %p1873_p8 = por %p124_p5, %p123_p3  ;;  %p160_p9 = scmp.lt.s32.totalorder %s1802_s17, 3 }
   0xc   : > { %s1879_s25 = scalar_select %p105_p7, %s1790_s14, %s107_s21  }
   0xd   : > { %p161_p10 = pnand %p1644_p6, %p160_p9 }
   0xe   : > { %p188_p11 = scmp.lt.s32.totalorder (!%p161_p10), %s1794_s15, 1  ;;  %s1666_s21 = sshll.u32 (!%p161_p10), %s1794_s15, 5 }
   0xf   : > { %164 = sbr.rel (%p161_p10) target bundleno = 497 (0x1f1), region = 32  ;;  %s1554_s27 = scalar_lea.hbm (!%p161_p10), %s2145_s3, %s1666_s21 }
  0x10   : > { %s1557_s29 = sshll.u32 (!%p161_p10), %s1554_s27, 4  ;;  %s1558_s29 = int_to_ptr.hbm [resolvable:$true] %s1557_s29 }
  0x11   : > { %s1738_s30 = sshra.s32 (!%p161_p10), %s1558_s29, 4  ;;  %s1739_s30 = int_to_ptr.hbm [resolvable:$true] %s1738_s30 }
  0x12   : > { %s1740_s4 = scalar_lea.hbm (!%p161_p10), %s1739_s30, 32  ;;  %p1745_p1 = scmp.lt.s32.totalorder (!%p161_p10), %s1739_s30, %s2145_s3 }
  0x13   : > { %p1741_p12 = scmp.ne.s32.totalorder (!%p161_p10), %s1739_s30, %s1740_s4 }
  0x14   : > { %v1651_v0 = vld [vmem:[%s2143_s1 + $0x18] sm:$0xff]  ;;  %v1650_v1 = vld [vmem:[%s2143_s1 + $0x10] sm:$0xff]  ;;  %v200_v2 = vld [vmem:[%s2143_s1 + $0x8] sm:$0xff]  ;;  %s189_s7 = scalar_select %p188_p11, %s1794_s15, 1  ;;  %vm207_vm0 = vcmask 130048   ;;  %vm1535_vm1 = vcmask 261120  }
  0x15   : > { %v1891_v3 = vand.u32 4294901760, %v1651_v0  ;;  %v1893_v4 = vand.u32 4294901760, %v1650_v1  ;;  %v1895_v5 = vand.u32 4294901760, %v200_v2  ;;  %v199_v6 = vld [vmem:[%s2143_s1] sm:$0xff]  ;;  %p1742_p13 = pnand %p1741_p12, %p1866_p4 }
  0x16   : > { %v1901_v7 = vand.u32 4294901760, %v199_v6  ;;  %s1665_s8 = sshll.u32 %s189_s7, 6  ;;  %s1744_s7 = scalar_lea.hbm %s2145_s3, 64 }
  0x17   : > { %v1904_v8 = vsub.f32 %v1651_v0, %v1891_v3  ;;  %v1907_v9 = vsub.f32 %v1650_v1, %v1893_v4  ;;  %330 = vmatpush.msra.mxu3 %v1891_v3  ;;  %229 = vmatpush.msra.mxu0 %v1891_v3  ;;  %v1912_v10 = vsub.f32 %v200_v2, %v1895_v5  ;;  %s1921_s11 = scalar_lea.vmem %s2142_s0, %s1665_s8  ;;  %p1743_p0 = pneg %p1742_p13 }
  0x18   : > { %v1915_v11 = vsub.f32 %v199_v6, %v1901_v7  ;;  %v1648_v15 = vld [vmem:[%s1921_s11 + $0x10] sm:$0xff]  ;;  %v1649_v16 = vld [vmem:[%s1921_s11 + $0x18] sm:$0xff]  ;;  %v197_v17 = vld [vmem:[%s1921_s11] sm:$0xff]  ;;  %p1746_p2 = scmp.lt.s32.totalorder %s1744_s7, %s1740_s4 }
  0x19   : > { %300 = vmatpush.msra.mxu2 %v1904_v8  ;;  %v1924_v12 = vand.u32 4294901760, %v1904_v8  ;;  %332 = vmatpush.msra.mxu3 %v1893_v4  ;;  %v1928_v13 = vand.u32 4294901760, %v1907_v9  ;;  %v1931_v14 = vand.u32 4294901760, %v1912_v10  ;;  %v209_v19 = vsel %vm207_vm0, %v1648_v15, 0  ;;  %v198_v34 = vld [vmem:[%s1921_s11 + $0x8] sm:$0xff]  ;;  %v1654_v52 = vld [vmem:[%s1921_s11 + $0x30] sm:$0xff] }
  0x1a   : > { %231 = vmatpush.msra.mxu0 %v1893_v4  ;;  %v1938_v18 = vand.u32 4294901760, %v1915_v11  ;;  %v212_v22 = vsel %vm207_vm0, %v1649_v16, 0  ;;  %v232_v23 = vand.u32 4294901760, %v209_v19  ;;  %v405_v26 = vsel %vm207_vm0, %v197_v17, 0  ;;  %v1655_v55 = vld [vmem:[%s1921_s11 + $0x38] sm:$0xff]  ;;  %v1652_v57 = vld [vmem:[%s1921_s11 + $0x20] sm:$0xff]  ;;  %p1747_p3 = por %p1746_p2, %p1745_p1 }
  0x1b   : > { %303 = vmatpush.msra.mxu2 %v1907_v9  ;;  %v266_v20 = vsub.f32 %v1904_v8, %v1924_v12  ;;  %v272_v21 = vsub.f32 %v1907_v9, %v1928_v13  ;;  %v1948_v24 = vand.u32 4294901760, %v212_v22  ;;  %v462_v25 = vsub.f32 %v1912_v10, %v1931_v14  ;;  %v1653_v1 = vld [vmem:[%s1921_s11 + $0x28] sm:$0xff]  ;;  %s185_s11 = sand.u32 1, %s1786_s13  }
  0x1c   : > { %363 = vmatpush.msrb.mxu0 %v1924_v12  ;;  %v1954_v29 = vand.u32 4294901760, %v405_v26  ;;  %v468_v30 = vsub.f32 %v1915_v11, %v1938_v18  ;;  %v233_v31 = vsub.f32 %v209_v19, %v232_v23  ;;  %v408_v38 = vsel %vm207_vm0, %v198_v34, 0  ;;  %s1645_s18 = sshll.u32 %s185_s11, 5  ;;  %s1541_s15 = scalar_lea.sflag [#allocation3], %s185_s11 }
  0x1d   : > { %425 = vmatpush.msrb.mxu2 %v1895_v5  ;;  %v267_v27 = vand.u32 4294901760, %v266_v20  ;;  %v273_v28 = vand.u32 4294901760, %v272_v21  ;;  %v241_v32 = vsub.f32 %v212_v22, %v1948_v24  ;;  %v1961_v33 = vand.u32 4294901760, %v462_v25  ;;  %s2093_s19 = scalar_lea.vmem [#allocation2], %s1645_s18  ;;  %p1748_p5 = pnand %p1747_p3, %p1743_p0 }
  0x1e   : > { %367 = vmatpush.msrb.mxu0 %v1928_v13  ;;  %v1964_v35 = vand.u32 4294901760, %v468_v30  ;;  %306 = vmatmul.f32.vlgmr.msra.gmra.mxu2 %v233_v31  ;;  %v234_v36 = vand.u32 4294901760, %v233_v31  ;;  %v429_v37 = vsub.f32 %v405_v26, %v1954_v29  ;;  %v436_v43 = vand.u32 4294901760, %v408_v38  ;;  %s1555_s28 = sshll.u32 %s2093_s19, 4  ;;  %s1556_s28 = int_to_ptr.vmem [resolvable:$true] %s1555_s28 }
  0x1f   : > { %427 = vmatpush.msrb.mxu2 %v1901_v7  ;;  %268 = vmatpush.msra.mxu1 %v267_v27  ;;  %v242_v40 = vand.u32 4294901760, %v241_v32  ;;  %v611_v53 = vsel %vm207_vm0, %v1654_v52, 0  ;;  %v614_v58 = vsel %vm207_vm0, %v1655_v55, 0  ;;  %v807_v59 = vsel %vm207_vm0, %v1652_v57, 0 }
  0x20   : > { %464 = vmatpush.msrb.mxu3 %v1961_v33  ;;  %v235_v39 = vsub.f32 %v233_v31, %v234_v36  ;;  %v430_v42 = vand.u32 4294901760, %v429_v37  ;;  %v437_v46 = vsub.f32 %v408_v38, %v436_v43  ;;  %v634_v54 = vand.u32 4294901760, %v611_v53 }
  0x21   : > { %274 = vmatpush.msra.mxu1 %v273_v28  ;;  %559 = vmatpush.msra.mxu2 %v1931_v14  ;;  %v243_v44 = vsub.f32 %v241_v32, %v242_v40  ;;  %v642_v61 = vand.u32 4294901760, %v614_v58  ;;  %v830_v62 = vand.u32 4294901760, %v807_v59 }
  0x22   : > { %336 = vmatmul.f32.vlgmr.msra.gmra.mxu3 %v234_v36  ;;  %276 = vmatmul.f32.vlgmr.msra.gmra.mxu1 %v232_v23  ;;  %v236_v41 = vand.u32 4294901760, %v235_v39  ;;  %v431_v45 = vsub.f32 %v429_v37, %v430_v42  ;;  %v438_v49 = vand.u32 4294901760, %v437_v46  ;;  %v635_v56 = vsub.f32 %v611_v53, %v634_v54 }
  0x23   : > { %392 = vmatpush.msrb.mxu1 %v1891_v3  ;;  %470 = vmatpush.msrb.mxu3 %v1964_v35  ;;  %v244_v47 = vand.u32 4294901760, %v243_v44  ;;  %v643_v0 = vsub.f32 %v614_v58, %v642_v61  ;;  %v831_v2 = vsub.f32 %v807_v59, %v830_v62 }
  0x24   : > { %563 = vmatpush.msra.mxu2 %v1938_v18  ;;  %237 = vmatmul.f32.vlgmr.msra.gmra.mxu0 %v236_v41  ;;  %v432_v48 = vand.u32 4294901760, %v431_v45  ;;  %v439_v50 = vsub.f32 %v437_v46, %v438_v49  ;;  %v636_v60 = vand.u32 4294901760, %v635_v56 }
  0x25   : > { %588 = vmatpush.msra.mxu3 %v1895_v5  ;;  %394 = vmatpush.msrb.mxu1 %v1893_v4  ;;  %v644_v6 = vand.u32 4294901760, %v643_v0 }
  0x26   : > { %496 = vmatpush.msra.mxu0 %v1912_v10  ;;  %311 = vmatmul.f32.gmra.mxu2 %v241_v32  ;;  %v440_v51 = vand.u32 4294901760, %v439_v50  ;;  %v637_v63 = vsub.f32 %v635_v56, %v636_v60 }
  0x27   : > { %526 = vmatpush.msra.mxu1 %v1895_v5  ;;  %590 = vmatpush.msra.mxu3 %v1901_v7 }
  0x28   : > { %499 = vmatpush.msra.mxu0 %v1915_v11 }
  0x29   : > { %528 = vmatpush.msra.mxu1 %v1901_v7 }
  0x2a   : > { %342 = vmatmul.f32.gmra.mxu3 %v242_v40  ;;  %280 = vmatmul.f32.gmra.mxu1 %v1948_v24 }
  0x2c   : > { %245 = vmatmul.f32.gmra.mxu0 %v244_v47 }
  0x2e   : > { %433 = vmatmul.f32.vlgmr.msrb.gmra.mxu2 %v432_v48 }
  0x2f   : > { %702 = vmatpush.msrb.mxu2 %v1904_v8  ;;  %v832_v8 = vand.u32 4294901760, %v831_v2 }
  0x31   : > { %705 = vmatpush.msrb.mxu2 %v1907_v9 }
  0x32   : > { %472 = vmatmul.f32.vlgmr.msrb.gmra.mxu3 %v1954_v29  ;;  %396 = vmatmul.f32.vlgmr.msrb.gmra.mxu1 %v232_v23 }
  0x33   : > { %732 = vmatpush.msrb.mxu3 %v1891_v3  ;;  %670 = vmatpush.msrb.mxu1 %v267_v27 }
  0x34   : > { %369 = vmatmul.f32.vlgmr.msrb.gmra.mxu0 %v232_v23 }
  0x35   : > { %734 = vmatpush.msrb.mxu3 %v1893_v4  ;;  %676 = vmatpush.msrb.mxu1 %v273_v28 }
  0x36   : > { %631 = vmatpush.msrb.mxu0 %v1891_v3  ;;  %441 = vmatmul.f32.gmra.mxu2 %v440_v51 }
  0x38   : > { %633 = vmatpush.msrb.mxu0 %v1893_v4 }
  0x3a   : > { %476 = vmatmul.f32.gmra.mxu3 %v436_v43  ;;  %400 = vmatmul.f32.gmra.mxu1 %v1948_v24 }
  0x3c   : > { %373 = vmatmul.f32.gmra.mxu0 %v1948_v24 }
  0x3e   : > { %565 = vmatmul.f32.vlgmr.msra.gmra.mxu2 %v1954_v29 }
  0x3f   : > { %827 = vmatpush.msra.mxu2 %v1895_v5 }
  0x41   : > { %829 = vmatpush.msra.mxu2 %v1901_v7 }
  0x42   : > { %592 = vmatmul.f32.vlgmr.msra.gmra.mxu3 %v1954_v29  ;;  %532 = vmatmul.f32.vlgmr.msra.gmra.mxu1 %v430_v42 }
  0x43   : > { %866 = vmatpush.msra.mxu3 %v1961_v33  ;;  %794 = vmatpush.msra.mxu1 %v1891_v3  ;;  %v810_v3 = vsel %vm207_vm0, %v1653_v1, 0 }
  0x44   : > { %502 = vmatmul.f32.vlgmr.msra.gmra.mxu0 %v429_v37  ;;  %v838_v9 = vand.u32 4294901760, %v810_v3 }
  0x45   : > { %872 = vmatpush.msra.mxu3 %v1964_v35  ;;  %796 = vmatpush.msra.mxu1 %v1893_v4  ;;  %v638_v4 = vand.u32 4294901760, %v637_v63 }
  0x46   : > { %765 = vmatpush.msra.mxu0 %v1924_v12  ;;  %569 = vmatmul.f32.gmra.mxu2 %v436_v43  ;;  %v645_v12 = vsub.f32 %v643_v0, %v644_v6 }
  0x48   : > { %769 = vmatpush.msra.mxu0 %v1928_v13  ;;  %v833_v13 = vsub.f32 %v831_v2, %v832_v8  ;;  %v646_v15 = vand.u32 4294901760, %v645_v12 }
  0x4a   : > { %596 = vmatmul.f32.gmra.mxu3 %v436_v43  ;;  %538 = vmatmul.f32.gmra.mxu1 %v438_v49  ;;  %v834_v16 = vand.u32 4294901760, %v833_v13 }
  0x4c   : > { %507 = vmatmul.f32.gmra.mxu0 %v437_v46 }
  0x4e   : > { %708 = vmatmul.f32.vlgmr.msrb.gmra.mxu2 %v635_v56 }
  0x4f   : > { %961 = vmatpush.msrb.mxu2 %v1931_v14  ;;  %v839_v14 = vsub.f32 %v810_v3, %v838_v9 }
  0x51   : > { %965 = vmatpush.msrb.mxu2 %v1938_v18  ;;  %v840_v17 = vand.u32 4294901760, %v839_v14 }
  0x52   : > { %738 = vmatmul.f32.vlgmr.msrb.gmra.mxu3 %v636_v60  ;;  %678 = vmatmul.f32.vlgmr.msrb.gmra.mxu1 %v634_v54 }
  0x53   : > { %990 = vmatpush.msrb.mxu3 %v1895_v5  ;;  %928 = vmatpush.msrb.mxu1 %v1895_v5  ;;  %v841_v5 = vsub.f32 %v839_v14, %v840_v17 }
  0x54   : > { %639 = vmatmul.f32.vlgmr.msrb.gmra.mxu0 %v638_v4 }
  0x55   : > { %992 = vmatpush.msrb.mxu3 %v1901_v7  ;;  %930 = vmatpush.msrb.mxu1 %v1901_v7  ;;  %v842_v18 = vand.u32 4294901760, %v841_v5 }
  0x56   : > { %898 = vmatpush.msrb.mxu0 %v1912_v10  ;;  %713 = vmatmul.f32.gmra.mxu2 %v643_v0 }
  0x58   : > { %901 = vmatpush.msrb.mxu0 %v1915_v11 }
  0x5a   : > { %744 = vmatmul.f32.gmra.mxu3 %v644_v6  ;;  %682 = vmatmul.f32.gmra.mxu1 %v642_v61 }
  0x5c   : > { %647 = vmatmul.f32.gmra.mxu0 %v646_v15 }
  0x5e   : > { %835 = vmatmul.f32.vlgmr.msra.gmra.mxu2 %v834_v16 }
  0x62   : > { %874 = vmatmul.f32.vlgmr.msra.gmra.mxu3 %v830_v62  ;;  %798 = vmatmul.f32.vlgmr.msra.gmra.mxu1 %v634_v54 }
  0x64   : > { %771 = vmatmul.f32.vlgmr.msra.gmra.mxu0 %v634_v54 }
  0x66   : > { %843 = vmatmul.f32.gmra.mxu2 %v842_v18 }
  0x6a   : > { %878 = vmatmul.f32.gmra.mxu3 %v838_v9  ;;  %802 = vmatmul.f32.gmra.mxu1 %v642_v61 }
  0x6c   : > { %775 = vmatmul.f32.gmra.mxu0 %v642_v61 }
  0x6e   : > { %967 = vmatmul.f32.vlgmr.msrb.gmra.mxu2 %v830_v62 }
  0x72   : > { %994 = vmatmul.f32.vlgmr.msrb.gmra.mxu3 %v830_v62  ;;  %934 = vmatmul.f32.vlgmr.msrb.gmra.mxu1 %v832_v8 }
  0x74   : > { %904 = vmatmul.f32.vlgmr.msrb.gmra.mxu0 %v831_v2 }
  0x76   : > { %971 = vmatmul.f32.gmra.mxu2 %v838_v9 }
  0x7a   : > { %998 = vmatmul.f32.gmra.mxu3 %v838_v9  ;;  %940 = vmatmul.f32.gmra.mxu1 %v840_v17 }
  0x7c   : > { %909 = vmatmul.f32.gmra.mxu0 %v839_v14 }
  0x9f   : > { %v277_v7 = vpop.f32.mrf.mxu1 }
  0xa1   : > { %v238_v10 = vpop.f32.mrf.mxu0  ;;  %v307_v11 = vpop.f32.mrf.mxu2 }
  0xa2   : > { %v278_v19 = vadd.f32 %v277_v7, %v238_v10 }
  0xa4   : > { %v308_v21 = vadd.f32 %v307_v11, %v278_v19 }
  0xa5   : > { %v337_v20 = vpop.f32.mrf.mxu3 }
  0xa6   : > { %v338_v23 = vadd.f32 %v337_v20, %v308_v21  ;;  %v1656_v20 = vld [vmem:[%s2144_s2 + $0x20] sm:$0xff] }
  0xa7   : > { %v281_v22 = vpop.f32.mrf.mxu1 }
  0xa9   : > { %v246_v24 = vpop.f32.mrf.mxu0  ;;  %v312_v25 = vpop.f32.mrf.mxu2 }
  0xaa   : > { %v282_v44 = vadd.f32 %v281_v22, %v246_v24 }
  0xac   : > { %v313_v47 = vadd.f32 %v312_v25, %v282_v44 }
  0xad   : > { %v343_v26 = vpop.f32.mrf.mxu3 }
  0xae   : > { %v344_v50 = vadd.f32 %v343_v26, %v313_v47  ;;  %v1008_v26 = vsel %vm207_vm0, %v1656_v20, 0 }
  0xaf   : > { %v397_v27 = vpop.f32.mrf.mxu1 }
  0xb1   : > { %v370_v28 = vpop.f32.mrf.mxu0  ;;  %v434_v29 = vpop.f32.mrf.mxu2 }
  0xb2   : > { %v371_v54 = vadd.f32 %v370_v28, %v338_v23 }
  0xb4   : > { %v398_v59 = vadd.f32 %v397_v27, %v371_v54 }
  0xb5   : > { %v473_v30 = vpop.f32.mrf.mxu3 }
  0xb6   : > { %v435_v0 = vadd.f32 %v434_v29, %v398_v59 }
  0xb7   : > { %v401_v31 = vpop.f32.mrf.mxu1 }
  0xb8   : > { %v474_v9 = vadd.f32 %v473_v30, %v435_v0 }
  0xb9   : > { %v374_v32 = vpop.f32.mrf.mxu0  ;;  %v442_v33 = vpop.f32.mrf.mxu2 }
  0xba   : > { %v375_v51 = vadd.f32 %v374_v32, %v344_v50  ;;  %v2020_v32 = vand.u32 4294901760, %v1008_v26 }
  0xbc   : > { %v402_v57 = vadd.f32 %v401_v31, %v375_v51 }
  0xbd   : > { %v477_v34 = vpop.f32.mrf.mxu3 }
  0xbe   : > { %v443_v61 = vadd.f32 %v442_v33, %v402_v57  ;;  %v1658_v57 = vld [vmem:[%s2144_s2 + $0x30] sm:$0xff] }
  0xbf   : > { %v533_v35 = vpop.f32.mrf.mxu1 }
  0xc0   : > { %v478_v4 = vadd.f32 %v477_v34, %v443_v61 }
  0xc1   : > { %v503_v36 = vpop.f32.mrf.mxu0  ;;  %v566_v37 = vpop.f32.mrf.mxu2 }
  0xc2   : > { %v504_v14 = vadd.f32 %v503_v36, %v474_v9 }
  0xc4   : > { %v534_v10 = vadd.f32 %v533_v35, %v504_v14  ;;  %v1659_v14 = vld [vmem:[%s2144_s2 + $0x38] sm:$0xff] }
  0xc5   : > { %v593_v38 = vpop.f32.mrf.mxu3 }
  0xc6   : > { %v567_v23 = vadd.f32 %v566_v37, %v534_v10  ;;  %v1657_v37 = vld [vmem:[%s2144_s2 + $0x28] sm:$0xff] }
  0xc7   : > { %v539_v39 = vpop.f32.mrf.mxu1 }
  0xc8   : > { %v594_v33 = vadd.f32 %v593_v38, %v567_v23 }
  0xc9   : > { %v508_v40 = vpop.f32.mrf.mxu0  ;;  %v570_v41 = vpop.f32.mrf.mxu2 }
  0xca   : > { %v509_v12 = vadd.f32 %v508_v40, %v478_v4  ;;  %v1038_v40 = vsub.f32 %v1008_v26, %v2020_v32 }
  0xcc   : > { %v540_v5 = vadd.f32 %v539_v39, %v509_v12 }
  0xcd   : > { %v597_v42 = vpop.f32.mrf.mxu3 }
  0xce   : > { %v571_v21 = vadd.f32 %v570_v41, %v540_v5  ;;  %v2028_v41 = vand.u32 4294901760, %v594_v33 }
  0xcf   : > { %v679_v43 = vpop.f32.mrf.mxu1 }
  0xd0   : > { %v598_v29 = vadd.f32 %v597_v42, %v571_v21  ;;  %v1355_v50 = vsub.f32 %v594_v33, %v2028_v41 }
  0xd1   : > { %v640_v45 = vpop.f32.mrf.mxu0  ;;  %v709_v46 = vpop.f32.mrf.mxu2 }
  0xd2   : > { %v680_v55 = vadd.f32 %v679_v43, %v640_v45  ;;  %v2022_v36 = vand.u32 4294901760, %v598_v29 }
  0xd4   : > { %v710_v60 = vadd.f32 %v709_v46, %v680_v55  ;;  %v1011_v46 = vsel %vm207_vm0, %v1657_v37, 0  ;;  %v1349_v38 = vsub.f32 %v598_v29, %v2022_v36 }
  0xd5   : > { %v739_v48 = vpop.f32.mrf.mxu3 }
  0xd6   : > { %v740_v1 = vadd.f32 %v739_v48, %v710_v60  ;;  %v1350_v55 = vand.u32 4294901760, %v1349_v38  ;;  %v1356_v60 = vand.u32 4294901760, %v1355_v50 }
  0xd7   : > { %v683_v49 = vpop.f32.mrf.mxu1 }
  0xd8   : > { %v1351_v0 = vsub.f32 %v1349_v38, %v1350_v55  ;;  %v1357_v4 = vsub.f32 %v1355_v50, %v1356_v60 }
  0xd9   : > { %v648_v52 = vpop.f32.mrf.mxu0  ;;  %v714_v53 = vpop.f32.mrf.mxu2 }
  0xda   : > { %v684_v2 = vadd.f32 %v683_v49, %v648_v52  ;;  %v1039_v49 = vand.u32 4294901760, %v1038_v40  ;;  %v2033_v52 = vand.u32 4294901760, %v1011_v46 }
  0xdc   : > { %v715_v13 = vadd.f32 %v714_v53, %v684_v2  ;;  %v1046_v61 = vsub.f32 %v1011_v46, %v2033_v52 }
  0xdd   : > { %v745_v56 = vpop.f32.mrf.mxu3 }
  0xde   : > { %v746_v18 = vadd.f32 %v745_v56, %v715_v13  ;;  %v1352_v13 = vand.u32 4294901760, %v1351_v0 }
  0xdf   : > { %v799_v58 = vpop.f32.mrf.mxu1 }
  0xe1   : > { %v772_v62 = vpop.f32.mrf.mxu0  ;;  %v836_v63 = vpop.f32.mrf.mxu2 }
  0xe2   : > { %v773_v6 = vadd.f32 %v772_v62, %v740_v1 }
  0xe4   : > { %v800_v15 = vadd.f32 %v799_v58, %v773_v6  ;;  %v1040_v58 = vsub.f32 %v1038_v40, %v1039_v49  ;;  %v1047_v6 = vand.u32 4294901760, %v1046_v61 }
  0xe5   : > { %v875_v3 = vpop.f32.mrf.mxu3 }
  0xe6   : > { %v837_v11 = vadd.f32 %v836_v63, %v800_v15  ;;  %v1014_v63 = vsel %vm207_vm0, %v1658_v57, 0  ;;  %v1041_v2 = vand.u32 4294901760, %v1040_v58 }
  0xe7   : > { %v803_v8 = vpop.f32.mrf.mxu1 }
  0xe8   : > { %v876_v24 = vadd.f32 %v875_v3, %v837_v11 }
  0xe9   : > { %v776_v16 = vpop.f32.mrf.mxu0  ;;  %v844_v17 = vpop.f32.mrf.mxu2 }
  0xea   : > { %v777_v19 = vadd.f32 %v776_v16, %v746_v18  ;;  %v1358_v16 = vand.u32 4294901760, %v1357_v4 }
  0xec   : > { %v804_v25 = vadd.f32 %v803_v8, %v777_v19  ;;  %v2043_v8 = vand.u32 4294901760, %v1014_v63 }
  0xed   : > { %v879_v7 = vpop.f32.mrf.mxu3 }
  0xee   : > { %v845_v34 = vadd.f32 %v844_v17, %v804_v25  ;;  %v1048_v17 = vsub.f32 %v1046_v61, %v1047_v6  ;;  %v1054_v5 = vsub.f32 %v1014_v63, %v2043_v8 }
  0xef   : > { %v935_v22 = vpop.f32.mrf.mxu1 }
  0xf0   : > { %v880_v43 = vadd.f32 %v879_v7, %v845_v34  ;;  %v1017_v7 = vsel %vm207_vm0, %v1659_v14, 0  ;;  %v1049_v11 = vand.u32 4294901760, %v1048_v17  ;;  %v1055_v19 = vand.u32 4294901760, %v1054_v5 }
  0xf1   : > { %v905_v27 = vpop.f32.mrf.mxu0  ;;  %v968_v28 = vpop.f32.mrf.mxu2  ;;  %v2055_v20 = vand.u32 4294901760, %v1017_v7 }
  0xf2   : > { %v906_v30 = vadd.f32 %v905_v27, %v876_v24  ;;  %v600_v24 = vld [vmem:[%s2144_s2] sm:$0xff] }
  0xf3   : > { %v1062_v23 = vsub.f32 %v1017_v7, %v2055_v20  ;;  %v1272_v25 = vsel %vm207_vm0, %v600_v24, 0 }
  0xf4   : > { %v936_v35 = vadd.f32 %v935_v22, %v906_v30  ;;  %v1056_v22 = vsub.f32 %v1054_v5, %v1055_v19  ;;  %v601_v30 = vld [vmem:[%s2144_s2 + $0x8] sm:$0xff] }
  0xf5   : > { %v995_v31 = vpop.f32.mrf.mxu3  ;;  %v1063_v27 = vand.u32 4294901760, %v1062_v23  ;;  %v1275_v33 = vsel %vm207_vm0, %v601_v30, 0 }
  0xf6   : > { %v969_v39 = vadd.f32 %v968_v28, %v936_v35  ;;  %v1057_v26 = vand.u32 4294901760, %v1056_v22  ;;  %v1301_v28 = vand.u32 4294901760, %v1272_v25 }
  0xf7   : > { %v941_v45 = vpop.f32.mrf.mxu1  ;;  %v1064_v29 = vsub.f32 %v1062_v23, %v1063_v27 }
  0xf8   : > { %v996_v42 = vadd.f32 %v995_v31, %v969_v39  ;;  %v1302_v31 = vsub.f32 %v1272_v25, %v1301_v28  ;;  %v1309_v39 = vand.u32 4294901760, %v1275_v33 }
  0xf9   : > { %v910_v44 = vpop.f32.mrf.mxu0  ;;  %v972_v48 = vpop.f32.mrf.mxu2  ;;  %v1065_v34 = vand.u32 4294901760, %v1064_v29 }
  0xfa   : > { %v911_v47 = vadd.f32 %v910_v44, %v880_v43  ;;  %v2035_v53 = vand.u32 4294901760, %v996_v42  ;;  %v1303_v35 = vand.u32 4294901760, %v1302_v31 }
  0xfc   : > { %v942_v51 = vadd.f32 %v941_v45, %v911_v47  ;;  %v1091_v62 = vsub.f32 %v996_v42, %v2035_v53  ;;  %v1304_v37 = vsub.f32 %v1302_v31, %v1303_v35  ;;  %v603_v45 = vld [vmem:[%s2144_s2 + $0x18] sm:$0xff] }
  0xfd   : > { %v999_v54 = vpop.f32.mrf.mxu3  ;;  %v1281_v47 = vsel %vm207_vm0, %v603_v45, 0 }
  0xfe   : > { %v973_v56 = vadd.f32 %v972_v48, %v942_v51  ;;  %v1092_v9 = vand.u32 4294901760, %v1091_v62  ;;  %v1305_v43 = vand.u32 4294901760, %v1304_v37 }
 0x100   : > { %v1000_v59 = vadd.f32 %v999_v54, %v973_v56  ;;  %v1093_v18 = vsub.f32 %v1091_v62, %v1092_v9 }
 0x102   : > { %v1033_v1 = vand.u32 4294901760, %v1000_v59  ;;  %v1094_v21 = vand.u32 4294901760, %v1093_v18 }
 0x104   : > { %v1085_v3 = vsub.f32 %v1000_v59, %v1033_v1  ;;  %1034 = vmatpush.msra.mxu0 %v1033_v1  ;;  %1169 = vmatpush.msra.mxu3 %v1033_v1 }
 0x106   : > { %v1086_v12 = vand.u32 4294901760, %v1085_v3  ;;  %1036 = vmatpush.msra.mxu0 %v2035_v53  ;;  %1129 = vmatpush.msra.mxu2 %v1085_v3 }
 0x107   : > { %1171 = vmatpush.msra.mxu3 %v2035_v53  ;;  %1042 = vmatmul.f32.vlgmr.msra.gmra.mxu0 %v1041_v2 }
 0x108   : > { %v1087_v15 = vsub.f32 %v1085_v3, %v1086_v12  ;;  %1132 = vmatpush.msra.mxu2 %v1091_v62  ;;  %1214 = vmatpush.msrb.mxu0 %v1086_v12 }
 0x109   : > { %1353 = vmatpush.msrb.mxu3 %v1352_v13  ;;  %1135 = vmatmul.f32.vlgmr.msra.gmra.mxu2 %v1038_v40  ;;  %v1310_v40 = vsub.f32 %v1275_v33, %v1309_v39 }
 0x10a   : > { %1298 = vmatpush.msrb.mxu2 %v2022_v36  ;;  %v1088_v10 = vand.u32 4294901760, %v1087_v15  ;;  %1175 = vmatmul.f32.vlgmr.msra.gmra.mxu3 %v1039_v49 }
 0x10b   : > { %1359 = vmatpush.msrb.mxu3 %v1358_v16  ;;  %1218 = vmatpush.msrb.mxu0 %v1092_v9  ;;  %v1311_v42 = vand.u32 4294901760, %v1310_v40 }
 0x10c   : > { %1300 = vmatpush.msrb.mxu2 %v2028_v41  ;;  %1089 = vmatpush.msra.mxu1 %v1088_v10 }
 0x10d   : > { %1515 = vmatpush.msra.mxu3 %v2022_v36  ;;  %1393 = vmatpush.msra.mxu0 %v1349_v38  ;;  %v1312_v46 = vsub.f32 %v1310_v40, %v1311_v42 }
 0x10e   : > { %1478 = vmatpush.msra.mxu2 %v1350_v55  ;;  %1095 = vmatpush.msra.mxu1 %v1094_v21 }
 0x10f   : > { %1517 = vmatpush.msra.mxu3 %v2028_v41  ;;  %1396 = vmatpush.msra.mxu0 %v1355_v50  ;;  %v1313_v48 = vand.u32 4294901760, %v1312_v46  ;;  %v1325_v50 = vand.u32 4294901760, %v1281_v47 }
 0x110   : > { %1482 = vmatpush.msra.mxu2 %v1356_v60  ;;  %1050 = vmatmul.f32.gmra.mxu0 %v1049_v11 }
 0x111   : > { %1097 = vmatmul.f32.vlgmr.msra.gmra.mxu1 %v2020_v32  ;;  %1140 = vmatmul.f32.gmra.mxu2 %v1046_v61 }
 0x112   : > { %1251 = vmatpush.msrb.mxu1 %v1033_v1  ;;  %1181 = vmatmul.f32.gmra.mxu3 %v1047_v6 }
 0x114   : > { %1253 = vmatpush.msrb.mxu1 %v2035_v53  ;;  %v1326_v53 = vsub.f32 %v1281_v47, %v1325_v50 }
 0x116   : > { %1433 = vmatpush.msra.mxu1 %v2022_v36  ;;  %v602_v36 = vld [vmem:[%s2144_s2 + $0x10] sm:$0xff]  ;;  %v1327_v55 = vand.u32 4294901760, %v1326_v53 }
 0x118   : > { %1435 = vmatpush.msra.mxu1 %v2028_v41  ;;  %1058 = vmatmul.f32.gmra.mxu0 %v1057_v26  ;;  %v1278_v41 = vsel %vm207_vm0, %v602_v36, 0  ;;  %v1328_v56 = vsub.f32 %v1326_v53, %v1327_v55 }
 0x119   : > { %1101 = vmatmul.f32.gmra.mxu1 %v2033_v52  ;;  %1145 = vmatmul.f32.gmra.mxu2 %v1054_v5  ;;  %v1317_v44 = vand.u32 4294901760, %v1278_v41 }
 0x11a   : > { %1187 = vmatmul.f32.gmra.mxu3 %v1055_v19  ;;  %v1329_v57 = vand.u32 4294901760, %v1328_v56 }
 0x11b   : > { %v1318_v38 = vsub.f32 %v1278_v41, %v1317_v44 }
 0x11d   : > { %v1319_v49 = vand.u32 4294901760, %v1318_v38 }
 0x11f   : > { %v1320_v51 = vsub.f32 %v1318_v38, %v1319_v49 }
 0x120   : > { %1066 = vmatmul.f32.gmra.mxu0 %v1065_v34 }
 0x121   : > { %1105 = vmatmul.f32.gmra.mxu1 %v2043_v8  ;;  %1150 = vmatmul.f32.gmra.mxu2 %v1062_v23  ;;  %v1321_v54 = vand.u32 4294901760, %v1320_v51 }
 0x122   : > { %1193 = vmatmul.f32.gmra.mxu3 %v1063_v27 }
 0x128   : > { %1220 = vmatmul.f32.vlgmr.msrb.gmra.mxu0 %v2020_v32 }
 0x129   : > { %1109 = vmatmul.f32.gmra.mxu1 %v2055_v20  ;;  %1306 = vmatmul.f32.vlgmr.msrb.gmra.mxu2 %v1305_v43 }
 0x12a   : > { %1361 = vmatmul.f32.vlgmr.msrb.gmra.mxu3 %v1301_v28 }
 0x130   : > { %1224 = vmatmul.f32.gmra.mxu0 %v2033_v52 }
 0x131   : > { %1255 = vmatmul.f32.vlgmr.msrb.gmra.mxu1 %v2020_v32  ;;  %1314 = vmatmul.f32.gmra.mxu2 %v1313_v48 }
 0x132   : > { %1365 = vmatmul.f32.gmra.mxu3 %v1309_v39 }
 0x138   : > { %1228 = vmatmul.f32.gmra.mxu0 %v2043_v8 }
 0x139   : > { %1259 = vmatmul.f32.gmra.mxu1 %v2033_v52  ;;  %1322 = vmatmul.f32.gmra.mxu2 %v1321_v54 }
 0x13a   : > { %1369 = vmatmul.f32.gmra.mxu3 %v1317_v44 }
 0x140   : > { %1232 = vmatmul.f32.gmra.mxu0 %v2055_v20 }
 0x141   : > { %1263 = vmatmul.f32.gmra.mxu1 %v2043_v8  ;;  %1330 = vmatmul.f32.gmra.mxu2 %v1329_v57 }
 0x142   : > { %1373 = vmatmul.f32.gmra.mxu3 %v1325_v50 }
 0x148   : > { %1399 = vmatmul.f32.vlgmr.msra.gmra.mxu0 %v1302_v31 }
 0x149   : > { %1267 = vmatmul.f32.gmra.mxu1 %v2055_v20  ;;  %1484 = vmatmul.f32.vlgmr.msra.gmra.mxu2 %v1301_v28 }
 0x14a   : > { %1519 = vmatmul.f32.vlgmr.msra.gmra.mxu3 %v1301_v28 }
 0x150   : > { %1404 = vmatmul.f32.gmra.mxu0 %v1310_v40 }
 0x151   : > { %1439 = vmatmul.f32.vlgmr.msra.gmra.mxu1 %v1303_v35  ;;  %1488 = vmatmul.f32.gmra.mxu2 %v1309_v39 }
 0x152   : > { %1523 = vmatmul.f32.gmra.mxu3 %v1309_v39 }
 0x158   : > { %1409 = vmatmul.f32.gmra.mxu0 %v1318_v38 }
 0x159   : > { %1445 = vmatmul.f32.gmra.mxu1 %v1311_v42  ;;  %1492 = vmatmul.f32.gmra.mxu2 %v1317_v44 }
 0x15a   : > { %1527 = vmatmul.f32.gmra.mxu3 %v1317_v44 }
 0x160   : > { %1414 = vmatmul.f32.gmra.mxu0 %v1326_v53 }
 0x161   : > { %1451 = vmatmul.f32.gmra.mxu1 %v1319_v49  ;;  %1496 = vmatmul.f32.gmra.mxu2 %v1325_v50 }
 0x162   : > { %1531 = vmatmul.f32.gmra.mxu3 %v1325_v50 }
 0x169   : > { %1457 = vmatmul.f32.gmra.mxu1 %v1327_v55 }
 0x184   : > { %v1043_v32 = vpop.f32.mrf.mxu0 }
 0x18c   : > { %v1136_v58 = vpop.f32.mrf.mxu2 }
 0x18d   : > { %v1051_v52 = vpop.f32.mrf.mxu0  ;;  %v1176_v60 = vpop.f32.mrf.mxu3 }
 0x18e   : > { %v1098_v59 = vpop.f32.mrf.mxu1 }
 0x18f   : > { %v1099_v10 = vadd.f32 %v1098_v59, %v1043_v32 }
 0x191   : > { %v1137_v11 = vadd.f32 %v1136_v58, %v1099_v10 }
 0x193   : > { %v1177_v23 = vadd.f32 %v1176_v60, %v1137_v11 }
 0x194   : > { %v1141_v62 = vpop.f32.mrf.mxu2 }
 0x195   : > { %v1059_v61 = vpop.f32.mrf.mxu0  ;;  %v1182_v0 = vpop.f32.mrf.mxu3 }
 0x196   : > { %v1102_v63 = vpop.f32.mrf.mxu1 }
 0x197   : > { %v1103_v24 = vadd.f32 %v1102_v63, %v1051_v52 }
 0x199   : > { %v1142_v26 = vadd.f32 %v1141_v62, %v1103_v24 }
 0x19b   : > { %v1183_v33 = vadd.f32 %v1182_v0, %v1142_v26 }
 0x19c   : > { %v1146_v2 = vpop.f32.mrf.mxu2 }
 0x19d   : > { %v1067_v1 = vpop.f32.mrf.mxu0  ;;  %v1188_v4 = vpop.f32.mrf.mxu3 }
 0x19e   : > { %v1106_v3 = vpop.f32.mrf.mxu1 }
 0x19f   : > { %v1107_v34 = vadd.f32 %v1106_v3, %v1059_v61 }
 0x1a1   : > { %v1147_v36 = vadd.f32 %v1146_v2, %v1107_v34 }
 0x1a3   : > { %v1189_v46 = vadd.f32 %v1188_v4, %v1147_v36 }
 0x1a4   : > { %v1151_v8 = vpop.f32.mrf.mxu2 }
 0x1a5   : > { %v1221_v6 = vpop.f32.mrf.mxu0  ;;  %v1194_v12 = vpop.f32.mrf.mxu3 }
 0x1a6   : > { %v1110_v9 = vpop.f32.mrf.mxu1  ;;  %v1222_v25 = vadd.f32 %v1221_v6, %v1177_v23 }
 0x1a7   : > { %v1111_v38 = vadd.f32 %v1110_v9, %v1067_v1 }
 0x1a9   : > { %v1152_v51 = vadd.f32 %v1151_v8, %v1111_v38 }
 0x1ab   : > { %v1195_v58 = vadd.f32 %v1194_v12, %v1152_v51 }
 0x1ac   : > { %v1307_v14 = vpop.f32.mrf.mxu2 }
 0x1ad   : > { %v1225_v13 = vpop.f32.mrf.mxu0  ;;  %v1362_v16 = vpop.f32.mrf.mxu3 }
 0x1ae   : > { %v1256_v15 = vpop.f32.mrf.mxu1  ;;  %v1226_v39 = vadd.f32 %v1225_v13, %v1183_v33 }
 0x1af   : > { %v1257_v27 = vadd.f32 %v1256_v15, %v1222_v25 }
 0x1b1   : > { %v1308_v35 = vadd.f32 %v1307_v14, %v1257_v27 }
 0x1b3   : > { %v1363_v37 = vadd.f32 %v1362_v16, %v1308_v35 }
 0x1b4   : > { %v1315_v5 = vpop.f32.mrf.mxu2 }
 0x1b5   : > { %v1229_v17 = vpop.f32.mrf.mxu0  ;;  %v1366_v7 = vpop.f32.mrf.mxu3 }
 0x1b6   : > { %v1260_v18 = vpop.f32.mrf.mxu1  ;;  %v1230_v49 = vadd.f32 %v1229_v17, %v1189_v46 }
 0x1b7   : > { %v1261_v40 = vadd.f32 %v1260_v18, %v1226_v39 }
 0x1b9   : > { %v1316_v47 = vadd.f32 %v1315_v5, %v1261_v40 }
 0x1bb   : > { %v1367_v53 = vadd.f32 %v1366_v7, %v1316_v47 }
 0x1bc   : > { %v1323_v20 = vpop.f32.mrf.mxu2 }
 0x1bd   : > { %v1233_v19 = vpop.f32.mrf.mxu0  ;;  %v1370_v22 = vpop.f32.mrf.mxu3 }
 0x1be   : > { %v1264_v21 = vpop.f32.mrf.mxu1  ;;  %v1234_v62 = vadd.f32 %v1233_v19, %v1195_v58 }
 0x1bf   : > { %v1265_v54 = vadd.f32 %v1264_v21, %v1230_v49 }
 0x1c1   : > { %v1324_v59 = vadd.f32 %v1323_v20, %v1265_v54 }
 0x1c3   : > { %v1371_v0 = vadd.f32 %v1370_v22, %v1324_v59 }
 0x1c4   : > { %v1331_v29 = vpop.f32.mrf.mxu2 }
 0x1c5   : > { %v1400_v28 = vpop.f32.mrf.mxu0  ;;  %v1374_v31 = vpop.f32.mrf.mxu3 }
 0x1c6   : > { %v1268_v30 = vpop.f32.mrf.mxu1  ;;  %v1401_v41 = vadd.f32 %v1400_v28, %v1363_v37 }
 0x1c7   : > { %v1269_v1 = vadd.f32 %v1268_v30, %v1234_v62 }
 0x1c9   : > { %v1332_v9 = vadd.f32 %v1331_v29, %v1269_v1 }
 0x1cb   : > { %v1375_v15 = vadd.f32 %v1374_v31, %v1332_v9 }
 0x1cc   : > { %v1485_v42 = vpop.f32.mrf.mxu2 }
 0x1cd   : > { %v1405_v43 = vpop.f32.mrf.mxu0  ;;  %v1520_v45 = vpop.f32.mrf.mxu3 }
 0x1ce   : > { %v1440_v44 = vpop.f32.mrf.mxu1  ;;  %v1406_v56 = vadd.f32 %v1405_v43, %v1367_v53 }
 0x1cf   : > { %v1441_v48 = vadd.f32 %v1440_v44, %v1401_v41 }
 0x1d1   : > { %v1486_v50 = vadd.f32 %v1485_v42, %v1441_v48 }
 0x1d3   : > { %v1521_v55 = vadd.f32 %v1520_v45, %v1486_v50 }
 0x1d4   : > { %v1489_v57 = vpop.f32.mrf.mxu2 }
 0x1d5   : > { %1536 = vst.msk [vmem:[%s2093_s19] sm:$0xff] %vm1535_vm1, %v1521_v55  ;;  %v1524_v52 = vpop.f32.mrf.mxu3  ;;  %v1410_v61 = vpop.f32.mrf.mxu0 }
 0x1d6   : > { %v1446_v32 = vpop.f32.mrf.mxu1  ;;  %v1411_v3 = vadd.f32 %v1410_v61, %v1371_v0 }
 0x1d7   : > { %v1447_v60 = vadd.f32 %v1446_v32, %v1406_v56 }
 0x1d9   : > { %v1490_v63 = vadd.f32 %v1489_v57, %v1447_v60 }
 0x1db   : > { %v1525_v2 = vadd.f32 %v1524_v52, %v1490_v63 }
 0x1dc   : > { %v1493_v4 = vpop.f32.mrf.mxu2 }
 0x1dd   : > { %1537 = vst.msk [vmem:[%s2093_s19 + $0x8] sm:$0xff] %vm1535_vm1, %v1525_v2  ;;  %v1528_v8 = vpop.f32.mrf.mxu3  ;;  %v1415_v14 = vpop.f32.mrf.mxu0 }
 0x1de   : > { %v1452_v6 = vpop.f32.mrf.mxu1  ;;  %v1416_v17 = vadd.f32 %v1415_v14, %v1375_v15 }
 0x1df   : > { %v1453_v13 = vadd.f32 %v1452_v6, %v1411_v3 }
 0x1e1   : > { %v1494_v12 = vadd.f32 %v1493_v4, %v1453_v13 }
 0x1e3   : > { %v1529_v16 = vadd.f32 %v1528_v8, %v1494_v12 }
 0x1e4   : > { %v1497_v18 = vpop.f32.mrf.mxu2 }
 0x1e5   : > { %1538 = vst.msk [vmem:[%s2093_s19 + $0x10] sm:$0xff] %vm1535_vm1, %v1529_v16  ;;  %v1532_v10 = vpop.f32.mrf.mxu3 }
 0x1e6   : > { %v1458_v5 = vpop.f32.mrf.mxu1 }
 0x1e7   : > { %v1459_v7 = vadd.f32 %v1458_v5, %v1416_v17 }
 0x1e9   : > { %v1498_v11 = vadd.f32 %v1497_v18, %v1459_v7 }
 0x1eb   : > { %v1533_v19 = vadd.f32 %v1532_v10, %v1498_v11 }
 0x1ed   : > { %1539 = vst.msk [vmem:[%s2093_s19 + $0x18] sm:$0xff] %vm1535_vm1, %v1533_v19 }
 0x1ee   : > { %1751 = shalt.err (!%p1748_p5)
}
 0x1ef   : > { %s1804_s10 = smov 128   ;;  %s1805_s11 = smov 8  }
 0x1f0   : > { %1667 = dma.vmem_to_hbm [thread:$0]  (%p1866_p4), %s1556_s28, 512, %s1558_s29, %s1541_s15, %s1804_s10, %s1804_s10, %s1805_s11  }
 0x1f1 PF: > { %p1673_p6 = scmp.ge.s32.totalorder %s1802_s17, 2  ;;  %s1572_s18 = sand.u32 1, %s1782_s12  }
 0x1f2   : > { %s1573_s19 = scalar_lea.sflag [#allocation3], %s1572_s18 }
 0x1f3   : > { %p1670_p7 = pnand %p1673_p6, %p1873_p8 }
 0x1f5   : > { %p1671_p9 = pneg %p1670_p7 }
 0x1f7   : > { %1777 = dma.done.wait (%p1671_p9), %s1573_s19, 512  }
 0x1f8   : > { %1779 = vsyncadd (%p1671_p9), %s1573_s19, 4294966784  ;;  %s16_s17 = sadd.s32 1, %s1802_s17   ;;  %s2148_s12 = smov %s1786_s13 }
 0x1f9   : > { %p13_p10 = scmp.ge.s32.totalorder %s16_s17, 4   ;;  %s2149_s13 = smov %s1790_s14 }
 0x1fa   : > { %s2150_s14 = smov %s1879_s25  ;;  %s2151_s15 = smov %s1798_s16 }
 0x1fb   : > { %s2152_s16 = smov %s2154_s20  ;;  %15 = sbr.rel (!%p13_p10) target bundleno = 4 (0x4), region = 72 }
 0x200   :  { %1579 = vsyncpa [#allocation3], 1 }
 0x201   :  { %1581 = vsyncpa [#allocation3 + $0x1], 1 }

</bundles_post_ra>
